<compile_context>
chip_gen: v7x
topology: tpu7x:2x2x1
jax: 0.10.0
libtpu: 0.0.40
codegen_flags: <defaults>
</compile_context>

<pallas_src>
import functools

import jax
import jax.numpy as jnp
from jax.experimental import pallas as pl
from jax.experimental.pallas import tpu as pltpu


def _round_up(x, m):
    return ((x + m - 1) // m) * m


def mlp_kernel(x_ref, w1_ref, b1_ref, w2_ref, b2_ref, o_ref):
    # x_ref: (TB, Din), w1_ref: (Din, H), b1_ref: (1, H)
    # w2_ref: (H, Dout), b2_ref: (1, Dout), o_ref: (TB, Dout)
    h = jnp.dot(x_ref[...], w1_ref[...],
                preferred_element_type=jnp.float32)          # MXU, f32 accumulate
    h = jnp.maximum(h + b1_ref[...], 0.0)                    # bias + ReLU in f32 (VPU)
    out = jnp.dot(h.astype(w2_ref.dtype), w2_ref[...],
                  preferred_element_type=jnp.float32)        # MXU, f32 accumulate
    o_ref[...] = (out + b2_ref[...]).astype(o_ref.dtype)


def _vmem_capacity_bytes():
    try:
        return int(pltpu.get_tpu_info().vmem_capacity_bytes)
    except Exception:
        return 64 * 1024 * 1024  # v7x per-TC VMEM: the smallest current generation


@functools.partial(jax.jit, static_argnames=("compute_dtype",))
def sequence_model_forward(x, w1, b1, w2, b2, *, compute_dtype=jnp.bfloat16):
    """y = ReLU(x @ w1 + b1) @ w2 + b2, applied over the last dim of x."""
    *lead, d_in = x.shape
    hidden = w1.shape[1]
    d_out = w2.shape[1]

    # nn.Linear acts on the last dim: flatten all leading dims into a row axis.
    B = 1
    for s in lead:
        B *= s
    x2 = x.reshape(B, d_in)

    out_dtype = x.dtype
    in_isz = jnp.dtype(compute_dtype).itemsize
    out_isz = jnp.dtype(out_dtype).itemsize

    # Cast once directly into the compute dtype (no f32 round-trip, no padding).
    x_c = x2.astype(compute_dtype)
    w1_c = w1.astype(compute_dtype)
    w2_c = w2.astype(compute_dtype)
    b1_c = b1.reshape(1, hidden).astype(jnp.float32)
    b2_c = b2.reshape(1, d_out).astype(jnp.float32)

    # ---- Batch-tile selection: adaptive to the per-generation VMEM budget. ----
    weight_bytes = in_isz * (d_in * hidden + hidden * d_out) + 4 * (hidden + d_out)
    budget = min(_vmem_capacity_bytes() // 2, 40 * 1024 * 1024)
    # TODO(synk): if weight_bytes ever exceeds the budget (huge hidden/d_out), add a
    # grid axis over hidden/d_out with an f32 accumulator scratch instead of keeping
    # both weights fully resident.
    row_budget = max(budget - weight_bytes, 1 * 1024 * 1024)
    per_row = (2 * in_isz * d_in          # x tile, double-buffered
               + 2 * out_isz * d_out      # out tile, double-buffered
               + 4 * hidden               # f32 hidden intermediate
               + 4 * max(d_out, 8))       # f32 pre-cast output slack
    block_b = min(B, row_budget // per_row, 2048)
    if B >= 1024:
        # Force >=2 grid steps so ("parallel",) shards across both v7x TensorCores.
        block_b = min(block_b, _round_up(pl.cdiv(B, 2), 8))
    if block_b >= B:
        block_b = B                       # single step; full-extent row block is always legal
    else:
        block_b = max(8, (block_b // 8) * 8)
    grid = (pl.cdiv(B, block_b),)

    # VMEM limit sized from the actual footprint, with headroom, well under 64 MiB.
    vmem_est = weight_bytes + block_b * per_row
    vmem_limit = int(min(max(2 * vmem_est, 32 * 1024 * 1024), 48 * 1024 * 1024))

    cost = pl.CostEstimate(
        flops=2 * B * (d_in * hidden + hidden * d_out),
        transcendentals=0,
        bytes_accessed=B * d_in * in_isz + weight_bytes + B * d_out * out_isz,
    )

    # Weights/biases: constant index_map => single-buffer them (halves their VMEM use).
    resident = functools.partial(pl.BlockSpec, pipeline_mode=pl.Buffered(1))

    out = pl.pallas_call(
        mlp_kernel,
        out_shape=jax.ShapeDtypeStruct((B, d_out), out_dtype),
        grid=grid,
        in_specs=[
            pl.BlockSpec((block_b, d_in), lambda i: (i, 0)),   # x: tiled over rows, ragged tail masked
            resident((d_in, hidden), lambda i: (0, 0)),        # w1: resident
            resident((1, hidden), lambda i: (0, 0)),           # b1: resident (f32)
            resident((hidden, d_out), lambda i: (0, 0)),       # w2: resident
            resident((1, d_out), lambda i: (0, 0)),            # b2: resident (f32)
        ],
        out_specs=pl.BlockSpec((block_b, d_out), lambda i: (i, 0)),
        compiler_params=pltpu.CompilerParams(
            dimension_semantics=("parallel",),
            vmem_limit_bytes=vmem_limit,
        ),
        cost_estimate=cost,
    )(x_c, w1_c, b1_c, w2_c, b2_c)

    return out.reshape(*lead, d_out)


def init_params(key, input_dim, hidden_dim, output_dim):
    # PyTorch default nn.Linear init: U(-1/sqrt(fan_in), 1/sqrt(fan_in)).
    k1, k2, k3, k4 = jax.random.split(key, 4)
    bound1 = 1.0 / jnp.sqrt(input_dim)
    bound2 = 1.0 / jnp.sqrt(hidden_dim)
    w1 = jax.random.uniform(k1, (input_dim, hidden_dim), jnp.float32, -bound1, bound1)
    b1 = jax.random.uniform(k2, (1, hidden_dim), jnp.float32, -bound1, bound1)
    w2 = jax.random.uniform(k3, (hidden_dim, output_dim), jnp.float32, -bound2, bound2)
    b2 = jax.random.uniform(k4, (1, output_dim), jnp.float32, -bound2, bound2)
    return w1, b1, w2, b2


if __name__ == "__main__":
    input_dim, hidden_dim, output_dim = 16, 32, 8
    seq, batch = 4, 8   # leading dims are flattened (nn.Linear acts on the last dim)

    key = jax.random.PRNGKey(0)
    kx, kp = jax.random.split(key)
    x = jax.random.normal(kx, (seq, batch, input_dim), jnp.float32)
    w1, b1, w2, b2 = init_params(kp, input_dim, hidden_dim, output_dim)

    # Pure-JAX reference.
    ref = jnp.maximum(x @ w1 + b1, 0.0) @ w2 + b2

    # f32 path (tolerance allows for default TPU matmul precision on either side).
    out_f32 = sequence_model_forward(x, w1, b1, w2, b2, compute_dtype=jnp.float32)
    out_f32 = jax.block_until_ready(out_f32)
    assert out_f32.shape == (seq, batch, output_dim)
    assert jnp.allclose(out_f32, ref, atol=2e-2, rtol=2e-2)

    # Default bf16 MXU path (all generations, f32 accumulation); bf16-rounded operands.
    out_bf16 = sequence_model_forward(x, w1, b1, w2, b2)
    out_bf16 = jax.block_until_ready(out_bf16)
    assert out_bf16.shape == (seq, batch, output_dim)
    assert jnp.allclose(out_bf16, ref, atol=1e-1, rtol=1e-1)

    print("KERNEL_OK")
</pallas_src>

<mosaic_0001>
module attributes {stable_mosaic.version = 11 : i64} {
  func.func @mlp_kernel(%arg0: i32, %arg1: memref<32x16xf32, #tpu.memory_space<vmem>>, %arg2: memref<16x32xf32, #tpu.memory_space<vmem>>, %arg3: memref<1x32xf32, #tpu.memory_space<vmem>>, %arg4: memref<32x8xf32, #tpu.memory_space<vmem>>, %arg5: memref<1x8xf32, #tpu.memory_space<vmem>>, %arg6: memref<32x8xf32, #tpu.memory_space<vmem>>) attributes {dimension_semantics = [#tpu.dimension_semantics<parallel>], iteration_bounds = array<i64: 1>, scalar_prefetch = 0 : i64, scratch_operands = 0 : i64, tpu.core_type = #tpu.core_type<tc>, window_params = [{transform_indices = @transform_0, window_bounds = array<i64: 32, 16>}, {pipeline_mode = #tpu.pipeline_mode<synchronous>, transform_indices = @transform_1, window_bounds = array<i64: 16, 32>}, {pipeline_mode = #tpu.pipeline_mode<synchronous>, transform_indices = @transform_2, window_bounds = array<i64: 1, 32>}, {pipeline_mode = #tpu.pipeline_mode<synchronous>, transform_indices = @transform_3, window_bounds = array<i64: 32, 8>}, {pipeline_mode = #tpu.pipeline_mode<synchronous>, transform_indices = @transform_4, window_bounds = array<i64: 1, 8>}, {transform_indices = @transform_5, window_bounds = array<i64: 32, 8>}]} {
    %c0 = arith.constant 0 : index
    %c0_0 = arith.constant 0 : index
    %0 = vector.load %arg1[%c0, %c0_0] : memref<32x16xf32, #tpu.memory_space<vmem>>, vector<32x16xf32>
    %c0_1 = arith.constant 0 : index
    %c0_2 = arith.constant 0 : index
    %1 = vector.load %arg2[%c0_1, %c0_2] : memref<16x32xf32, #tpu.memory_space<vmem>>, vector<16x32xf32>
    %cst = arith.constant dense<0.000000e+00> : vector<32x32xf32>
    %2 = tpu.matmul %0, %1, %cst {dimension_numbers = #tpu.dot_dimension_numbers<[1], [0], [0], [1], [0, 0, 1, 1], [], []>} : vector<32x16xf32>, vector<16x32xf32>, vector<32x32xf32> -> vector<32x32xf32>
    %c0_3 = arith.constant 0 : index
    %c0_4 = arith.constant 0 : index
    %3 = vector.load %arg3[%c0_3, %c0_4] : memref<1x32xf32, #tpu.memory_space<vmem>>, vector<1x32xf32>
    %4 = vector.broadcast %3 : vector<1x32xf32> to vector<32x32xf32>
    %5 = arith.addf %2, %4 : vector<32x32xf32>
    %cst_5 = arith.constant 0.000000e+00 : f32
    %6 = vector.broadcast %cst_5 : f32 to vector<32x32xf32>
    %7 = arith.maximumf %5, %6 : vector<32x32xf32>
    %c0_6 = arith.constant 0 : index
    %c0_7 = arith.constant 0 : index
    %8 = vector.load %arg4[%c0_6, %c0_7] : memref<32x8xf32, #tpu.memory_space<vmem>>, vector<32x8xf32>
    %cst_8 = arith.constant dense<0.000000e+00> : vector<32x8xf32>
    %9 = tpu.matmul %7, %8, %cst_8 {dimension_numbers = #tpu.dot_dimension_numbers<[1], [0], [0], [1], [0, 0, 1, 1], [], []>} : vector<32x32xf32>, vector<32x8xf32>, vector<32x8xf32> -> vector<32x8xf32>
    %c0_9 = arith.constant 0 : index
    %c0_10 = arith.constant 0 : index
    %10 = vector.load %arg5[%c0_9, %c0_10] : memref<1x8xf32, #tpu.memory_space<vmem>>, vector<1x8xf32>
    %11 = vector.broadcast %10 : vector<1x8xf32> to vector<32x8xf32>
    %12 = arith.addf %9, %11 : vector<32x8xf32>
    %c0_11 = arith.constant 0 : index
    %c0_12 = arith.constant 0 : index
    %13 = vector.load %arg6[%c0_11, %c0_12] : memref<32x8xf32, #tpu.memory_space<vmem>>, vector<32x8xf32>
    tpu.vector_store %arg6[%c0_11, %c0_12], %12 {strides = array<i32>} : memref<32x8xf32, #tpu.memory_space<vmem>>, vector<32x8xf32>,
    return
  }
  func.func @transform_0(%arg0: i32) -> (i32, i32) {
    %c0_i32 = arith.constant 0 : i32
    %c0_i32_0 = arith.constant 0 : i32
    return %arg0, %c0_i32 : i32, i32
  }
  func.func @transform_1(%arg0: i32) -> (i32, i32) {
    %c0_i32 = arith.constant 0 : i32
    %c0_i32_0 = arith.constant 0 : i32
    %c0_i32_1 = arith.constant 0 : i32
    return %c0_i32, %c0_i32_0 : i32, i32
  }
  func.func @transform_2(%arg0: i32) -> (i32, i32) {
    %c0_i32 = arith.constant 0 : i32
    %c0_i32_0 = arith.constant 0 : i32
    %c0_i32_1 = arith.constant 0 : i32
    return %c0_i32, %c0_i32_0 : i32, i32
  }
  func.func @transform_3(%arg0: i32) -> (i32, i32) {
    %c0_i32 = arith.constant 0 : i32
    %c0_i32_0 = arith.constant 0 : i32
    %c0_i32_1 = arith.constant 0 : i32
    return %c0_i32, %c0_i32_0 : i32, i32
  }
  func.func @transform_4(%arg0: i32) -> (i32, i32) {
    %c0_i32 = arith.constant 0 : i32
    %c0_i32_0 = arith.constant 0 : i32
    %c0_i32_1 = arith.constant 0 : i32
    return %c0_i32, %c0_i32_0 : i32, i32
  }
  func.func @transform_5(%arg0: i32) -> (i32, i32) {
    %c0_i32 = arith.constant 0 : i32
    %c0_i32_0 = arith.constant 0 : i32
    return %arg0, %c0_i32 : i32, i32
  }
}

</mosaic_0001>

<bundles_post_ra>
// kernel: sequence_model_forward.1
= control target key start
LH: loop header
LB: loop body
LE: loop exit
PB: predicated region body
PF: predicated region fallthrough
CT: control target
= control target key end

     0   :  { %10 = vsyncpa [#allocation3], 0  ;;  %s491_s0 = inlined_call_operand.vmem [shape: f32[32,16], index: 0, kind: input, shape index: {}]   ;;  %s492_s1 = inlined_call_operand.hbm [shape: f32[16,32], index: 1, kind: input, shape index: {}]   ;;  %s493_s2 = inlined_call_operand.vmem [shape: f32[1,32], index: 2, kind: input, shape index: {}]   ;;  %s494_s3 = inlined_call_operand.vmem [shape: f32[32,8], index: 3, kind: input, shape index: {}]   ;;  %s495_s4 = inlined_call_operand.vmem [shape: f32[1,8], index: 4, kind: input, shape index: {}]   ;;  %s496_s5 = inlined_call_operand.hbm [shape: f32[32,8], index: 5, kind: output, shape index: {}]  }
   0x1   :  { %11 = vsyncpa [#allocation4], 0  ;;  %s393_s18 = smov [#allocation2]   ;;  %s345_s22 = scalar_lea.hbm %s492_s1, 256 }
   0x2   :  { %s19_s19 = sshll.u32 %s393_s18, 4  ;;  %p346_p0 = scmp.ne.s32.totalorder %s492_s1, %s345_s22  ;;  %s20_s19 = int_to_ptr.vmem [resolvable:$true] %s19_s19 }
   0x3   :  { %p349_p1 = scmp.lt.u32.totalorder %s345_s22, %s492_s1 }
   0x5   :  { %p351_p2 = pnand %p349_p1, %p346_p0 }
   0x7   :  { %354 = shalt.err (!%p351_p2)
}
   0x8   :  { %s355_s27 = scalar_lea.vmem %s20_s19, 256  ;;  %p360_p4 = scmp.lt.s32.totalorder %s20_s19, %s20_s19 }
   0x9   :  { %p356_p3 = scmp.ne.s32.totalorder %s20_s19, %s355_s27  ;;  %p361_p5 = scmp.lt.s32.totalorder %s355_s27, %s355_s27 }
   0xb   :  { %p362_p6 = por %p361_p5, %p360_p4 }
   0xd   :  { %p363_p7 = pnand %p362_p6, %p356_p3 }
   0xf   :  { %366 = shalt.err (!%p363_p7)
}
  0x10   :  { %s394_s28 = smov 128   ;;  %s395_s29 = smov 8  }
  0x11   :  { %25 = dma.hbm_to_vmem [thread:$0]  %s492_s1, 256, %s20_s19, [#allocation3], %s394_s28, %s394_s28, %s395_s29  }
  0x12   :  { %389 = dma.done.wait [#allocation3], 256  }
  0x13   :  { %390 = vsyncadd [#allocation3], 4294967040  ;;  %vm48_vm0 = vcmask 130048   ;;  %v39_v0 = vld [vmem:[#allocation2] sm:$0xff]  ;;  %v40_v1 = vld [vmem:[#allocation2 + $0x8] sm:$0xff]  ;;  %vm161_vm1 = vcmask 261120  }
  0x14   :  { %v35_v2 = vld [vmem:[%s491_s0] sm:$0xff]  ;;  %v329_v3 = vpack.c.bf16 %v40_v1, %v39_v0  ;;  %v151_v5 = vld [vmem:[%s494_s3 + $0x8] sm:$0xff]  ;;  %v37_v8 = vld [vmem:[%s491_s0 + $0x10] sm:$0xff]  ;;  %vm259_vm2 = vcmask 64512  }
  0x15   :  { %309 = vmatprep.mubr.msk.f32.mxu0 %vm48_vm0, %v35_v2  ;;  %v150_v4 = vld [vmem:[%s494_s3] sm:$0xff]  ;;  %v36_v7 = vld [vmem:[%s491_s0 + $0x8] sm:$0xff]  ;;  %v38_v9 = vld [vmem:[%s491_s0 + $0x18] sm:$0xff] }
  0x16   :  { %330 = vmatprep.subr.bf16.mxu0 %v329_v3  ;;  %v333_v6 = vpack.c.bf16 %v151_v5, %v150_v4  ;;  %v152_v10 = vld [vmem:[%s494_s3 + $0x10] sm:$0xff]  ;;  %v153_v11 = vld [vmem:[%s494_s3 + $0x18] sm:$0xff]  ;;  %v281_v13 = vld [vmem:[%s493_s2] ss:$0 sm:$0xff]  ;;  %s396_s2 = smov [#allocation5]  }
  0x17   :  { %332 = vmatpush3.bf16.msra.mxu0 %v329_v3  ;;  %v337_v12 = vpack.c.bf16 %v153_v11, %v152_v10  ;;  %v286_v26 = vld [vmem:[%s495_s4] ss:$0 sm:$0xff]  ;;  %s269_s24 = sshll.u32 %s396_s2, 4  ;;  %s270_s24 = int_to_ptr.vmem [resolvable:$true] %s269_s24 }
  0x18   :  { %334 = vmatprep.subr.bf16.mxu1 %v333_v6  ;;  %s367_s25 = scalar_lea.vmem %s270_s24, 512  ;;  %p372_p9 = scmp.lt.s32.totalorder %s270_s24, %s270_s24 }
  0x19   :  { %336 = vmatpush3.bf16.msra.mxu1 %v333_v6  ;;  %p368_p8 = scmp.ne.s32.totalorder %s270_s24, %s367_s25  ;;  %p373_p10 = scmp.lt.s32.totalorder %s367_s25, %s367_s25 }
  0x1a   :  { %310 = vmatmul.mubr.msk.f32.vlgmr.msra.gmra.mrb[0].mxu0 %vm48_vm0, %v36_v7  ;;  %338 = vmatprep.subr.bf16.mxu1 %v337_v12 }
  0x1b   :  { %312 = vmatprep.mubr.msk.f32.mxu0 %vm48_vm0, %v37_v8  ;;  %p374_p11 = por %p373_p10, %p372_p9 }
  0x1d   :  { %340 = vmatpush3.bf16.msra.mxu1 %v337_v12  ;;  %p375_p12 = pnand %p374_p11, %p368_p8 }
  0x1e   :  { %313 = vmatmul.mubr.msk.f32.gmra.mrb[2].mxu0 %vm48_vm0, %v38_v9 }
  0xed   :  { %v311_v14 = vpop.f32.mrb[0].mxu0 }
  0xee   :  { %v133_v15 = vadd.f32 %v311_v14, %v281_v13  ;;  %v127_v16 = vpop.f32.mrb[1].mxu0 }
  0xef   :  { %v128_v17 = vadd.f32 %v281_v13, %v127_v16 }
  0xf0   :  { %v147_v20 = vmax.f32 %v133_v15, 0.0 }
  0xf1   :  { %v146_v18 = vmax.f32 %v128_v17, 0.0  ;;  %v314_v19 = vpop.f32.mrb[2].mxu0 }
  0xf2   :  { %v143_v21 = vadd.f32 %v314_v19, %v281_v13  ;;  %v137_v22 = vpop.f32.mrb[3].mxu0 }
  0xf3   :  { %v138_v23 = vadd.f32 %v281_v13, %v137_v22  ;;  %323 = vmatprep.mubr.msk.f32.mxu1 %vm161_vm1, %v146_v18 }
  0xf4   :  { %324 = vmatmul.mubr.msk.f32.vlgmr.msra.gmra.mrb[0].mxu1 %vm161_vm1, %v147_v20  ;;  %v149_v25 = vmax.f32 %v143_v21, 0.0 }
  0xf5   :  { %v148_v24 = vmax.f32 %v138_v23, 0.0 }
  0xf7   :  { %326 = vmatprep.mubr.msk.f32.mxu1 %vm161_vm1, %v148_v24 }
  0xf8   :  { %327 = vmatmul.mubr.msk.f32.gmra.mrb[2].mxu1 %vm161_vm1, %v149_v25 }
 0x1c7   :  { %v325_v27 = vpop.f32.mrb[0].mxu1 }
 0x1c8   :  { %v246_v28 = vadd.f32 %v325_v27, %v286_v26  ;;  %v240_v29 = vpop.f32.mrb[1].mxu1 }
 0x1c9   :  { %v241_v30 = vadd.f32 %v286_v26, %v240_v29 }
 0x1ca   :  { %261 = vst.msk [vmem:[#allocation5 + $0x8] sm:$0xff] %vm259_vm2, %v246_v28 }
 0x1cb   :  { %260 = vst.msk [vmem:[#allocation5] sm:$0xff] %vm259_vm2, %v241_v30  ;;  %v328_v31 = vpop.f32.mrb[2].mxu1 }
 0x1cc   :  { %v256_v32 = vadd.f32 %v328_v31, %v286_v26  ;;  %v250_v33 = vpop.f32.mrb[3].mxu1 }
 0x1cd   :  { %v251_v34 = vadd.f32 %v286_v26, %v250_v33 }
 0x1ce   :  { %263 = vst.msk [vmem:[#allocation5 + $0x18] sm:$0xff] %vm259_vm2, %v256_v32 }
 0x1cf   :  { %262 = vst.msk [vmem:[#allocation5 + $0x10] sm:$0xff] %vm259_vm2, %v251_v34 }
 0x1d0   :  { %378 = shalt.err (!%p375_p12)
}
 0x1d1   :  { %s379_s27 = scalar_lea.hbm %s496_s5, 512 }
 0x1d2   :  { %p380_p13 = scmp.ne.s32.totalorder %s496_s5, %s379_s27  ;;  %p383_p0 = scmp.lt.u32.totalorder %s379_s27, %s496_s5 }
 0x1d4   :  { %p385_p1 = pnand %p383_p0, %p380_p13 }
 0x1d6   :  { %388 = shalt.err (!%p385_p1)
}
 0x1d7   :  { %275 = dma.vmem_to_hbm [thread:$0]  %s270_s24, 512, %s496_s5, [#allocation4], %s394_s28, %s394_s28, %s395_s29  }
 0x1d8   :  { %391 = dma.done.wait [#allocation4], 512  }
 0x1d9   :  { %392 = vsyncadd [#allocation4], 4294966784 }
 0x1da   :  { %279 = vsyncpa [#allocation3], 1 }
 0x1db   :  { %280 = vsyncpa [#allocation4], 1 }

</bundles_post_ra>
